<compile_context>
chip_gen: v7x
topology: tpu7x:2x2x1
jax: 0.10.0
libtpu: 0.0.40
codegen_flags: <defaults>
</compile_context>

<pallas_src>
import functools

import jax
import jax.numpy as jnp
import numpy as np
from jax import lax
from jax.experimental import pallas as pl
from jax.experimental.pallas import tpu as pltpu


def _gating_attention_kernel(
    qd_ref,    # (1, TQ, A)
    md_ref,    # (1, K,  M)
    bias_ref,  # (1, TQ, K)   (batched bias + nonbatched bias, pre-added)
    qw_ref,    # (A, H*C)     scale pre-folded
    kw_ref,    # (M, H*C)
    vw_ref,    # (M, H*V)
    gw_ref,    # (A, H*V)
    gb_ref,    # (1, H*V)
    ow_ref,    # (H*V, O)
    ob_ref,    # (1, O)
    out_ref,   # (1, TQ, O)
    *,
    num_head,
    key_dim,
    value_dim,
):
    qd = qd_ref[0]          # [TQ, A]
    md = md_ref[0]          # [K,  M]
    dt = qd.dtype           # compute dtype for MXU operands (bf16 or f32)

    # Fused (all-head) projections: lane-dense N = H*C / H*V, f32 accumulation.
    q = jnp.dot(qd, qw_ref[...], preferred_element_type=jnp.float32).astype(dt)  # [TQ, H*C]
    k = jnp.dot(md, kw_ref[...], preferred_element_type=jnp.float32).astype(dt)  # [K,  H*C]
    v = jnp.dot(md, vw_ref[...], preferred_element_type=jnp.float32).astype(dt)  # [K,  H*V]

    # Gating: sigmoid(q_data @ gating_w + gating_b), all heads fused.  (f32 elementwise.)
    gate = jnp.dot(qd, gw_ref[...], preferred_element_type=jnp.float32) + gb_ref[...]
    gate = jax.nn.sigmoid(gate)                                                   # [TQ, H*V]

    bias = bias_ref[0].astype(jnp.float32)                                        # [TQ, K]

    # Per-head attention (softmax is inherently per-head over the key axis).
    parts = []
    for h in range(num_head):
        qh = q[:, h * key_dim:(h + 1) * key_dim]                                  # [TQ, C]
        kh = k[:, h * key_dim:(h + 1) * key_dim]                                  # [K,  C]
        vh = v[:, h * value_dim:(h + 1) * value_dim]                              # [K,  V]

        # q @ k^T in NT form via dot_general (no explicit transpose relayout).
        logits = lax.dot_general(
            qh, kh, (((1,), (1,)), ((), ())),
            preferred_element_type=jnp.float32,
        ) + bias                                                                  # [TQ, K]

        m = jnp.max(logits, axis=-1, keepdims=True)
        e = jnp.exp(logits - m)
        # approx=False keeps exact f32 fidelity vs. the reference; flip to approx=True
        # (EUP slot) if the accuracy budget allows.
        w = e * pl.reciprocal(jnp.sum(e, axis=-1, keepdims=True), approx=False)

        parts.append(
            jnp.dot(w.astype(dt), vh, preferred_element_type=jnp.float32)         # [TQ, V]
        )

    weighted = jnp.concatenate(parts, axis=-1) * gate                             # [TQ, H*V]

    # Single fused output projection over the H*V contraction dim, bias folded into the store.
    out = jnp.dot(weighted.astype(dt), ow_ref[...],
                  preferred_element_type=jnp.float32) + ob_ref[...]               # [TQ, O]
    out_ref[0] = out.astype(out_ref.dtype)


def gating_attention(q_data, m_data, bias, nonbatched_bias, params, *, block_q=None):
    """q_data: [B,Q,A], m_data: [B,K,M], bias: [B,Q,K], nonbatched_bias: [Q,K] or None.

    Returns float32 [B, Q, output_dim].  Inputs/weights are used in the dtype of q_data
    (pass bf16 activations for the bf16 MXU path); accumulation is always f32.
    """
    B, Q, A = q_data.shape
    _, K, M = m_data.shape

    query_w = params["query_w"]      # [A, H, C]
    key_w = params["key_w"]          # [M, H, C]
    value_w = params["value_w"]      # [M, H, V]
    gating_w = params["gating_w"]    # [A, H, V]
    gating_b = params["gating_b"]    # [H, V]
    output_w = params["output_w"]    # [H, V, O]
    output_b = params["output_b"]    # [O]

    H, C = query_w.shape[1], query_w.shape[2]
    V = value_w.shape[2]
    O = output_w.shape[2]
    scale = float(C) ** (-0.5)

    dt = q_data.dtype  # compute dtype (no forced f32 upcasts)

    # Head-fused weight slabs: pure reshapes (row-major, head-major on the lane axis).
    # Scale is folded into query_w.  For inference loops these can be pre-folded offline.
    qw = (query_w * scale).reshape(A, H * C).astype(dt)
    kw = key_w.reshape(M, H * C).astype(dt)
    vw = value_w.reshape(M, H * V).astype(dt)
    gw = gating_w.reshape(A, H * V).astype(dt)
    gb = gating_b.reshape(1, H * V).astype(jnp.float32)
    ow = output_w.reshape(H * V, O).astype(dt)
    ob = output_b.reshape(1, O).astype(jnp.float32)

    # Pre-add the shared bias once in the wrapper (drops one VPU add per head per step and
    # avoids DMA-ing a zeros array when the nonbatched bias is absent).
    if nonbatched_bias is not None and nonbatched_bias.size > 0:
        bias_c = (bias + nonbatched_bias[None, :, :]).astype(dt)
    else:
        bias_c = bias.astype(dt)

    # Q tiling: second "parallel" grid axis (megacore sharding, bounded VMEM on v7x).
    if block_q is None:
        block_q = min(Q, 256)
    if Q % block_q != 0:
        block_q = Q
    grid = (B, Q // block_q)

    kernel = functools.partial(
        _gating_attention_kernel, num_head=H, key_dim=C, value_dim=V
    )

    m_data = m_data.astype(dt)

    out = pl.pallas_call(
        kernel,
        out_shape=jax.ShapeDtypeStruct((B, Q, O), jnp.float32),
        grid_spec=pltpu.PrefetchScalarGridSpec(
            num_scalar_prefetch=0,
            grid=grid,
            in_specs=[
                pl.BlockSpec((1, block_q, A), lambda b, qi: (b, qi, 0)),   # q_data
                pl.BlockSpec((1, K, M), lambda b, qi: (b, 0, 0)),          # m_data
                pl.BlockSpec((1, block_q, K), lambda b, qi: (b, qi, 0)),   # combined bias
                # Weights: constant block index -> fetched once, VMEM-resident across grid.
                pl.BlockSpec((A, H * C), lambda b, qi: (0, 0)),            # query_w (scaled)
                pl.BlockSpec((M, H * C), lambda b, qi: (0, 0)),            # key_w
                pl.BlockSpec((M, H * V), lambda b, qi: (0, 0)),            # value_w
                pl.BlockSpec((A, H * V), lambda b, qi: (0, 0)),            # gating_w
                pl.BlockSpec((1, H * V), lambda b, qi: (0, 0)),            # gating_b
                pl.BlockSpec((H * V, O), lambda b, qi: (0, 0)),            # output_w
                pl.BlockSpec((1, O), lambda b, qi: (0, 0)),                # output_b
            ],
            out_specs=pl.BlockSpec((1, block_q, O), lambda b, qi: (b, qi, 0)),
        ),
        compiler_params=pltpu.CompilerParams(
            dimension_semantics=("parallel", "parallel"),
            # Safe on every generation (matches v6e/v7x scoped default, raises v5e's 16 MiB);
            # bump further on v5e/v6e (128 MiB physical) for long-sequence AlphaFold shapes.
            vmem_limit_bytes=32 * 1024 * 1024,
        ),
    )(q_data, m_data, bias_c, qw, kw, vw, gw, gb, ow, ob)
    return out


def _reference(q_data, m_data, bias, nonbatched_bias, params):
    C = params["query_w"].shape[2]
    q = jnp.einsum("bqa,ahc->bqhc", q_data, params["query_w"]) * (C ** -0.5)
    k = jnp.einsum("bka,ahc->bkhc", m_data, params["key_w"])
    v = jnp.einsum("bka,ahc->bkhc", m_data, params["value_w"])
    logits = jnp.einsum("bqhc,bkhc->bhqk", q, k) + bias[:, None, :, :]
    if nonbatched_bias is not None:
        logits = logits + nonbatched_bias[None, None, :, :]
    weights = jax.nn.softmax(logits, axis=-1)
    weighted_avg = jnp.einsum("bhqk,bkhc->bqhc", weights, v)
    gate = jnp.einsum("bqc,chv->bqhv", q_data, params["gating_w"]) + params["gating_b"]
    gate = jax.nn.sigmoid(gate)
    weighted_avg = weighted_avg * gate
    out = jnp.einsum("bqhc,hco->bqo", weighted_avg, params["output_w"]) + params["output_b"]
    return out


if __name__ == "__main__":
    # Small, module-consistent shapes.
    B, Q, K = 2, 8, 8
    a_dim, m_dim = 32, 32
    num_head = 4
    output_dim = 32
    key_dim = a_dim // num_head     # 8 per head
    value_dim = m_dim // num_head   # 8 per head

    root = jax.random.PRNGKey(0)
    keys = jax.random.split(root, 11)

    params = {
        "query_w": 0.1 * jax.random.normal(keys[0], (a_dim, num_head, key_dim), jnp.float32),
        "key_w": 0.1 * jax.random.normal(keys[1], (m_dim, num_head, key_dim), jnp.float32),
        "value_w": 0.1 * jax.random.normal(keys[2], (m_dim, num_head, value_dim), jnp.float32),
        "gating_w": 0.1 * jax.random.normal(keys[3], (a_dim, num_head, value_dim), jnp.float32),
        "gating_b": 0.1 * jax.random.normal(keys[4], (num_head, value_dim), jnp.float32),
        "output_w": 0.1 * jax.random.normal(keys[5], (num_head, value_dim, output_dim), jnp.float32),
        "output_b": 0.1 * jax.random.normal(keys[6], (output_dim,), jnp.float32),
    }

    q_data = jax.random.normal(keys[7], (B, Q, a_dim), jnp.float32)
    m_data = jax.random.normal(keys[8], (B, K, m_dim), jnp.float32)
    bias = 0.5 * jax.random.normal(keys[9], (B, Q, K), jnp.float32)
    nonbatched_bias = 0.5 * jax.random.normal(keys[10], (Q, K), jnp.float32)

    ref = _reference(q_data, m_data, bias, nonbatched_bias, params)

    # f32 path: exact-tolerance check against the reference.
    out = gating_attention(q_data, m_data, bias, nonbatched_bias, params)
    out = jax.block_until_ready(out)
    np.testing.assert_allclose(np.asarray(out), np.asarray(ref), rtol=1e-4, atol=1e-5)

    # bf16 activation path (halved HBM traffic, bf16 MXU, f32 accumulation): loose tolerance.
    out_bf16 = gating_attention(
        q_data.astype(jnp.bfloat16),
        m_data.astype(jnp.bfloat16),
        bias.astype(jnp.bfloat16),
        nonbatched_bias.astype(jnp.bfloat16),
        params,
    )
    out_bf16 = jax.block_until_ready(out_bf16)
    np.testing.assert_allclose(np.asarray(out_bf16), np.asarray(ref), rtol=5e-2, atol=5e-2)

    # Also exercise the "no nonbatched bias" fast path.
    out_nb = jax.block_until_ready(
        gating_attention(q_data, m_data, bias, None, params)
    )
    ref_nb = _reference(q_data, m_data, bias, None, params)
    np.testing.assert_allclose(np.asarray(out_nb), np.asarray(ref_nb), rtol=1e-4, atol=1e-5)

    print("KERNEL_OK")
</pallas_src>

<mosaic_0001>
module attributes {stable_mosaic.version = 11 : i64} {
  func.func @_gating_attention_kernel(%arg0: i32, %arg1: i32, %arg2: memref<1x8x32xf32, #tpu.memory_space<vmem>>, %arg3: memref<1x8x32xf32, #tpu.memory_space<vmem>>, %arg4: memref<1x8x8xf32, #tpu.memory_space<vmem>>, %arg5: memref<32x32xf32, #tpu.memory_space<vmem>>, %arg6: memref<32x32xf32, #tpu.memory_space<vmem>>, %arg7: memref<32x32xf32, #tpu.memory_space<vmem>>, %arg8: memref<32x32xf32, #tpu.memory_space<vmem>>, %arg9: memref<1x32xf32, #tpu.memory_space<vmem>>, %arg10: memref<32x32xf32, #tpu.memory_space<vmem>>, %arg11: memref<1x32xf32, #tpu.memory_space<vmem>>, %arg12: memref<1x8x32xf32, #tpu.memory_space<vmem>>) attributes {dimension_semantics = [#tpu.dimension_semantics<parallel>, #tpu.dimension_semantics<parallel>], iteration_bounds = array<i64: 2, 1>, scalar_prefetch = 0 : i64, scratch_operands = 0 : i64, tpu.core_type = #tpu.core_type<tc>, window_params = [{transform_indices = @transform_0, window_bounds = array<i64: 1, 8, 32>}, {transform_indices = @transform_1, window_bounds = array<i64: 1, 8, 32>}, {transform_indices = @transform_2, window_bounds = array<i64: 1, 8, 8>}, {pipeline_mode = #tpu.pipeline_mode<synchronous>, transform_indices = @transform_3, window_bounds = array<i64: 32, 32>}, {pipeline_mode = #tpu.pipeline_mode<synchronous>, transform_indices = @transform_4, window_bounds = array<i64: 32, 32>}, {pipeline_mode = #tpu.pipeline_mode<synchronous>, transform_indices = @transform_5, window_bounds = array<i64: 32, 32>}, {pipeline_mode = #tpu.pipeline_mode<synchronous>, transform_indices = @transform_6, window_bounds = array<i64: 32, 32>}, {pipeline_mode = #tpu.pipeline_mode<synchronous>, transform_indices = @transform_7, window_bounds = array<i64: 1, 32>}, {pipeline_mode = #tpu.pipeline_mode<synchronous>, transform_indices = @transform_8, window_bounds = array<i64: 32, 32>}, {pipeline_mode = #tpu.pipeline_mode<synchronous>, transform_indices = @transform_9, window_bounds = array<i64: 1, 32>}, {transform_indices = @transform_10, window_bounds = array<i64: 1, 8, 32>}]} {
    %c0 = arith.constant 0 : index
    %c0_0 = arith.constant 0 : index
    %c0_1 = arith.constant 0 : index
    %0 = vector.load %arg2[%c0, %c0_0, %c0_1] : memref<1x8x32xf32, #tpu.memory_space<vmem>>, vector<1x8x32xf32>
    %1 = vector.shape_cast %0 : vector<1x8x32xf32> to vector<8x32xf32>
    %c0_2 = arith.constant 0 : index
    %c0_3 = arith.constant 0 : index
    %c0_4 = arith.constant 0 : index
    %2 = vector.load %arg3[%c0_2, %c0_3, %c0_4] : memref<1x8x32xf32, #tpu.memory_space<vmem>>, vector<1x8x32xf32>
    %3 = vector.shape_cast %2 : vector<1x8x32xf32> to vector<8x32xf32>
    %c0_5 = arith.constant 0 : index
    %c0_6 = arith.constant 0 : index
    %4 = vector.load %arg5[%c0_5, %c0_6] : memref<32x32xf32, #tpu.memory_space<vmem>>, vector<32x32xf32>
    %cst = arith.constant dense<0.000000e+00> : vector<8x32xf32>
    %5 = tpu.matmul %1, %4, %cst {dimension_numbers = #tpu.dot_dimension_numbers<[1], [0], [0], [1], [0, 0, 1, 1], [], []>} : vector<8x32xf32>, vector<32x32xf32>, vector<8x32xf32> -> vector<8x32xf32>
    %c0_7 = arith.constant 0 : index
    %c0_8 = arith.constant 0 : index
    %6 = vector.load %arg6[%c0_7, %c0_8] : memref<32x32xf32, #tpu.memory_space<vmem>>, vector<32x32xf32>
    %cst_9 = arith.constant dense<0.000000e+00> : vector<8x32xf32>
    %7 = tpu.matmul %3, %6, %cst_9 {dimension_numbers = #tpu.dot_dimension_numbers<[1], [0], [0], [1], [0, 0, 1, 1], [], []>} : vector<8x32xf32>, vector<32x32xf32>, vector<8x32xf32> -> vector<8x32xf32>
    %c0_10 = arith.constant 0 : index
    %c0_11 = arith.constant 0 : index
    %8 = vector.load %arg7[%c0_10, %c0_11] : memref<32x32xf32, #tpu.memory_space<vmem>>, vector<32x32xf32>
    %cst_12 = arith.constant dense<0.000000e+00> : vector<8x32xf32>
    %9 = tpu.matmul %3, %8, %cst_12 {dimension_numbers = #tpu.dot_dimension_numbers<[1], [0], [0], [1], [0, 0, 1, 1], [], []>} : vector<8x32xf32>, vector<32x32xf32>, vector<8x32xf32> -> vector<8x32xf32>
    %c0_13 = arith.constant 0 : index
    %c0_14 = arith.constant 0 : index
    %10 = vector.load %arg8[%c0_13, %c0_14] : memref<32x32xf32, #tpu.memory_space<vmem>>, vector<32x32xf32>
    %cst_15 = arith.constant dense<0.000000e+00> : vector<8x32xf32>
    %11 = tpu.matmul %1, %10, %cst_15 {dimension_numbers = #tpu.dot_dimension_numbers<[1], [0], [0], [1], [0, 0, 1, 1], [], []>} : vector<8x32xf32>, vector<32x32xf32>, vector<8x32xf32> -> vector<8x32xf32>
    %c0_16 = arith.constant 0 : index
    %c0_17 = arith.constant 0 : index
    %12 = vector.load %arg9[%c0_16, %c0_17] : memref<1x32xf32, #tpu.memory_space<vmem>>, vector<1x32xf32>
    %13 = vector.broadcast %12 : vector<1x32xf32> to vector<8x32xf32>
    %14 = arith.addf %11, %13 : vector<8x32xf32>
    %15 = arith.negf %14 : vector<8x32xf32>
    %16 = math.exp %15 : vector<8x32xf32>
    %cst_18 = arith.constant 1.000000e+00 : f32
    %17 = vector.broadcast %cst_18 : f32 to vector<8x32xf32>
    %18 = arith.addf %17, %16 : vector<8x32xf32>
    %19 = arith.divf %17, %18 : vector<8x32xf32>
    %c0_19 = arith.constant 0 : index
    %c0_20 = arith.constant 0 : index
    %c0_21 = arith.constant 0 : index
    %20 = vector.load %arg4[%c0_19, %c0_20, %c0_21] : memref<1x8x8xf32, #tpu.memory_space<vmem>>, vector<1x8x8xf32>
    %21 = vector.shape_cast %20 : vector<1x8x8xf32> to vector<8x8xf32>
    %22 = vector.extract_strided_slice %5 {offsets = [0, 0], sizes = [8, 8], strides = [1, 1]} : vector<8x32xf32> to vector<8x8xf32>
    %23 = vector.extract_strided_slice %7 {offsets = [0, 0], sizes = [8, 8], strides = [1, 1]} : vector<8x32xf32> to vector<8x8xf32>
    %24 = vector.extract_strided_slice %9 {offsets = [0, 0], sizes = [8, 8], strides = [1, 1]} : vector<8x32xf32> to vector<8x8xf32>
    %cst_22 = arith.constant dense<0.000000e+00> : vector<8x8xf32>
    %25 = tpu.matmul %22, %23, %cst_22 {dimension_numbers = #tpu.dot_dimension_numbers<[1], [1], [0], [0], [0, 0, 1, 0], [], []>} : vector<8x8xf32>, vector<8x8xf32>, vector<8x8xf32> -> vector<8x8xf32>
    %26 = arith.addf %25, %21 : vector<8x8xf32>
    %cst_23 = arith.constant dense<0xFF800000> : vector<8xf32>
    %27 = vector.multi_reduction <maximumf>, %26, %cst_23 [1] : vector<8x8xf32> to vector<8xf32>
    %28 = vector.shape_cast %27 : vector<8xf32> to vector<8x1xf32>
    %29 = vector.broadcast %28 : vector<8x1xf32> to vector<8x8xf32>
    %30 = arith.subf %26, %29 : vector<8x8xf32>
    %31 = math.exp %30 : vector<8x8xf32>
    %cst_24 = arith.constant dense<0.000000e+00> : vector<8xf32>
    %32 = vector.multi_reduction <add>, %31, %cst_24 [1] : vector<8x8xf32> to vector<8xf32>
    %33 = vector.shape_cast %32 : vector<8xf32> to vector<8x1xf32>
    %34 = tpu.reciprocal %33 : vector<8x1xf32> -> vector<8x1xf32>
    %35 = vector.broadcast %34 : vector<8x1xf32> to vector<8x8xf32>
    %36 = arith.mulf %31, %35 : vector<8x8xf32>
    %cst_25 = arith.constant dense<0.000000e+00> : vector<8x8xf32>
    %37 = tpu.matmul %36, %24, %cst_25 {dimension_numbers = #tpu.dot_dimension_numbers<[1], [0], [0], [1], [0, 0, 1, 1], [], []>} : vector<8x8xf32>, vector<8x8xf32>, vector<8x8xf32> -> vector<8x8xf32>
    %38 = vector.extract_strided_slice %5 {offsets = [0, 8], sizes = [8, 8], strides = [1, 1]} : vector<8x32xf32> to vector<8x8xf32>
    %39 = vector.extract_strided_slice %7 {offsets = [0, 8], sizes = [8, 8], strides = [1, 1]} : vector<8x32xf32> to vector<8x8xf32>
    %40 = vector.extract_strided_slice %9 {offsets = [0, 8], sizes = [8, 8], strides = [1, 1]} : vector<8x32xf32> to vector<8x8xf32>
    %cst_26 = arith.constant dense<0.000000e+00> : vector<8x8xf32>
    %41 = tpu.matmul %38, %39, %cst_26 {dimension_numbers = #tpu.dot_dimension_numbers<[1], [1], [0], [0], [0, 0, 1, 0], [], []>} : vector<8x8xf32>, vector<8x8xf32>, vector<8x8xf32> -> vector<8x8xf32>
    %42 = arith.addf %41, %21 : vector<8x8xf32>
    %cst_27 = arith.constant dense<0xFF800000> : vector<8xf32>
    %43 = vector.multi_reduction <maximumf>, %42, %cst_27 [1] : vector<8x8xf32> to vector<8xf32>
    %44 = vector.shape_cast %43 : vector<8xf32> to vector<8x1xf32>
    %45 = vector.broadcast %44 : vector<8x1xf32> to vector<8x8xf32>
    %46 = arith.subf %42, %45 : vector<8x8xf32>
    %47 = math.exp %46 : vector<8x8xf32>
    %cst_28 = arith.constant dense<0.000000e+00> : vector<8xf32>
    %48 = vector.multi_reduction <add>, %47, %cst_28 [1] : vector<8x8xf32> to vector<8xf32>
    %49 = vector.shape_cast %48 : vector<8xf32> to vector<8x1xf32>
    %50 = tpu.reciprocal %49 : vector<8x1xf32> -> vector<8x1xf32>
    %51 = vector.broadcast %50 : vector<8x1xf32> to vector<8x8xf32>
    %52 = arith.mulf %47, %51 : vector<8x8xf32>
    %cst_29 = arith.constant dense<0.000000e+00> : vector<8x8xf32>
    %53 = tpu.matmul %52, %40, %cst_29 {dimension_numbers = #tpu.dot_dimension_numbers<[1], [0], [0], [1], [0, 0, 1, 1], [], []>} : vector<8x8xf32>, vector<8x8xf32>, vector<8x8xf32> -> vector<8x8xf32>
    %54 = vector.extract_strided_slice %5 {offsets = [0, 16], sizes = [8, 8], strides = [1, 1]} : vector<8x32xf32> to vector<8x8xf32>
    %55 = vector.extract_strided_slice %7 {offsets = [0, 16], sizes = [8, 8], strides = [1, 1]} : vector<8x32xf32> to vector<8x8xf32>
    %56 = vector.extract_strided_slice %9 {offsets = [0, 16], sizes = [8, 8], strides = [1, 1]} : vector<8x32xf32> to vector<8x8xf32>
    %cst_30 = arith.constant dense<0.000000e+00> : vector<8x8xf32>
    %57 = tpu.matmul %54, %55, %cst_30 {dimension_numbers = #tpu.dot_dimension_numbers<[1], [1], [0], [0], [0, 0, 1, 0], [], []>} : vector<8x8xf32>, vector<8x8xf32>, vector<8x8xf32> -> vector<8x8xf32>
    %58 = arith.addf %57, %21 : vector<8x8xf32>
    %cst_31 = arith.constant dense<0xFF800000> : vector<8xf32>
    %59 = vector.multi_reduction <maximumf>, %58, %cst_31 [1] : vector<8x8xf32> to vector<8xf32>
    %60 = vector.shape_cast %59 : vector<8xf32> to vector<8x1xf32>
    %61 = vector.broadcast %60 : vector<8x1xf32> to vector<8x8xf32>
    %62 = arith.subf %58, %61 : vector<8x8xf32>
    %63 = math.exp %62 : vector<8x8xf32>
    %cst_32 = arith.constant dense<0.000000e+00> : vector<8xf32>
    %64 = vector.multi_reduction <add>, %63, %cst_32 [1] : vector<8x8xf32> to vector<8xf32>
    %65 = vector.shape_cast %64 : vector<8xf32> to vector<8x1xf32>
    %66 = tpu.reciprocal %65 : vector<8x1xf32> -> vector<8x1xf32>
    %67 = vector.broadcast %66 : vector<8x1xf32> to vector<8x8xf32>
    %68 = arith.mulf %63, %67 : vector<8x8xf32>
    %cst_33 = arith.constant dense<0.000000e+00> : vector<8x8xf32>
    %69 = tpu.matmul %68, %56, %cst_33 {dimension_numbers = #tpu.dot_dimension_numbers<[1], [0], [0], [1], [0, 0, 1, 1], [], []>} : vector<8x8xf32>, vector<8x8xf32>, vector<8x8xf32> -> vector<8x8xf32>
    %70 = vector.extract_strided_slice %5 {offsets = [0, 24], sizes = [8, 8], strides = [1, 1]} : vector<8x32xf32> to vector<8x8xf32>
    %71 = vector.extract_strided_slice %7 {offsets = [0, 24], sizes = [8, 8], strides = [1, 1]} : vector<8x32xf32> to vector<8x8xf32>
    %72 = vector.extract_strided_slice %9 {offsets = [0, 24], sizes = [8, 8], strides = [1, 1]} : vector<8x32xf32> to vector<8x8xf32>
    %cst_34 = arith.constant dense<0.000000e+00> : vector<8x8xf32>
    %73 = tpu.matmul %70, %71, %cst_34 {dimension_numbers = #tpu.dot_dimension_numbers<[1], [1], [0], [0], [0, 0, 1, 0], [], []>} : vector<8x8xf32>, vector<8x8xf32>, vector<8x8xf32> -> vector<8x8xf32>
    %74 = arith.addf %73, %21 : vector<8x8xf32>
    %cst_35 = arith.constant dense<0xFF800000> : vector<8xf32>
    %75 = vector.multi_reduction <maximumf>, %74, %cst_35 [1] : vector<8x8xf32> to vector<8xf32>
    %76 = vector.shape_cast %75 : vector<8xf32> to vector<8x1xf32>
    %77 = vector.broadcast %76 : vector<8x1xf32> to vector<8x8xf32>
    %78 = arith.subf %74, %77 : vector<8x8xf32>
    %79 = math.exp %78 : vector<8x8xf32>
    %cst_36 = arith.constant dense<0.000000e+00> : vector<8xf32>
    %80 = vector.multi_reduction <add>, %79, %cst_36 [1] : vector<8x8xf32> to vector<8xf32>
    %81 = vector.shape_cast %80 : vector<8xf32> to vector<8x1xf32>
    %82 = tpu.reciprocal %81 : vector<8x1xf32> -> vector<8x1xf32>
    %83 = vector.broadcast %82 : vector<8x1xf32> to vector<8x8xf32>
    %84 = arith.mulf %79, %83 : vector<8x8xf32>
    %cst_37 = arith.constant dense<0.000000e+00> : vector<8x8xf32>
    %85 = tpu.matmul %84, %72, %cst_37 {dimension_numbers = #tpu.dot_dimension_numbers<[1], [0], [0], [1], [0, 0, 1, 1], [], []>} : vector<8x8xf32>, vector<8x8xf32>, vector<8x8xf32> -> vector<8x8xf32>
    %86 = tpu.concatenate %37, %53, %69, %85 in 1 : vector<8x8xf32>, vector<8x8xf32>, vector<8x8xf32>, vector<8x8xf32> -> vector<8x32xf32>
    %87 = arith.mulf %86, %19 : vector<8x32xf32>
    %c0_38 = arith.constant 0 : index
    %c0_39 = arith.constant 0 : index
    %88 = vector.load %arg10[%c0_38, %c0_39] : memref<32x32xf32, #tpu.memory_space<vmem>>, vector<32x32xf32>
    %cst_40 = arith.constant dense<0.000000e+00> : vector<8x32xf32>
    %89 = tpu.matmul %87, %88, %cst_40 {dimension_numbers = #tpu.dot_dimension_numbers<[1], [0], [0], [1], [0, 0, 1, 1], [], []>} : vector<8x32xf32>, vector<32x32xf32>, vector<8x32xf32> -> vector<8x32xf32>
    %c0_41 = arith.constant 0 : index
    %c0_42 = arith.constant 0 : index
    %90 = vector.load %arg11[%c0_41, %c0_42] : memref<1x32xf32, #tpu.memory_space<vmem>>, vector<1x32xf32>
    %91 = vector.broadcast %90 : vector<1x32xf32> to vector<8x32xf32>
    %92 = arith.addf %89, %91 : vector<8x32xf32>
    %c0_43 = arith.constant 0 : index
    %c0_44 = arith.constant 0 : index
    %c0_45 = arith.constant 0 : index
    %93 = vector.load %arg12[%c0_43, %c0_44, %c0_45] : memref<1x8x32xf32, #tpu.memory_space<vmem>>, vector<1x8x32xf32>
    %94 = vector.shape_cast %93 : vector<1x8x32xf32> to vector<8x32xf32>
    %95 = vector.shape_cast %92 : vector<8x32xf32> to vector<1x8x32xf32>
    tpu.vector_store %arg12[%c0_43, %c0_44, %c0_45], %95 {strides = array<i32>} : memref<1x8x32xf32, #tpu.memory_space<vmem>>, vector<1x8x32xf32>,
    return
  }
  func.func @transform_0(%arg0: i32, %arg1: i32) -> (i32, i32, i32) {
    %c0_i32 = arith.constant 0 : i32
    %c0_i32_0 = arith.constant 0 : i32
    return %arg0, %arg1, %c0_i32 : i32, i32, i32
  }
  func.func @transform_1(%arg0: i32, %arg1: i32) -> (i32, i32, i32) {
    %c0_i32 = arith.constant 0 : i32
    %c0_i32_0 = arith.constant 0 : i32
    %c0_i32_1 = arith.constant 0 : i32
    return %arg0, %c0_i32, %c0_i32_0 : i32, i32, i32
  }
  func.func @transform_2(%arg0: i32, %arg1: i32) -> (i32, i32, i32) {
    %c0_i32 = arith.constant 0 : i32
    %c0_i32_0 = arith.constant 0 : i32
    return %arg0, %arg1, %c0_i32 : i32, i32, i32
  }
  func.func @transform_3(%arg0: i32, %arg1: i32) -> (i32, i32) {
    %c0_i32 = arith.constant 0 : i32
    %c0_i32_0 = arith.constant 0 : i32
    %c0_i32_1 = arith.constant 0 : i32
    return %c0_i32, %c0_i32_0 : i32, i32
  }
  func.func @transform_4(%arg0: i32, %arg1: i32) -> (i32, i32) {
    %c0_i32 = arith.constant 0 : i32
    %c0_i32_0 = arith.constant 0 : i32
    %c0_i32_1 = arith.constant 0 : i32
    return %c0_i32, %c0_i32_0 : i32, i32
  }
  func.func @transform_5(%arg0: i32, %arg1: i32) -> (i32, i32) {
    %c0_i32 = arith.constant 0 : i32
    %c0_i32_0 = arith.constant 0 : i32
    %c0_i32_1 = arith.constant 0 : i32
    return %c0_i32, %c0_i32_0 : i32, i32
  }
  func.func @transform_6(%arg0: i32, %arg1: i32) -> (i32, i32) {
    %c0_i32 = arith.constant 0 : i32
    %c0_i32_0 = arith.constant 0 : i32
    %c0_i32_1 = arith.constant 0 : i32
    return %c0_i32, %c0_i32_0 : i32, i32
  }
  func.func @transform_7(%arg0: i32, %arg1: i32) -> (i32, i32) {
    %c0_i32 = arith.constant 0 : i32
    %c0_i32_0 = arith.constant 0 : i32
    %c0_i32_1 = arith.constant 0 : i32
    return %c0_i32, %c0_i32_0 : i32, i32
  }
  func.func @transform_8(%arg0: i32, %arg1: i32) -> (i32, i32) {
    %c0_i32 = arith.constant 0 : i32
    %c0_i32_0 = arith.constant 0 : i32
    %c0_i32_1 = arith.constant 0 : i32
    return %c0_i32, %c0_i32_0 : i32, i32
  }
  func.func @transform_9(%arg0: i32, %arg1: i32) -> (i32, i32) {
    %c0_i32 = arith.constant 0 : i32
    %c0_i32_0 = arith.constant 0 : i32
    %c0_i32_1 = arith.constant 0 : i32
    return %c0_i32, %c0_i32_0 : i32, i32
  }
  func.func @transform_10(%arg0: i32, %arg1: i32) -> (i32, i32, i32) {
    %c0_i32 = arith.constant 0 : i32
    %c0_i32_0 = arith.constant 0 : i32
    return %arg0, %arg1, %c0_i32 : i32, i32, i32
  }
}

</mosaic_0001>

<bundles_post_ra>
// kernel: tpu_custom_call.1
= control target key start
LH: loop header
LB: loop body
LE: loop exit
PB: predicated region body
PF: predicated region fallthrough
CT: control target
= control target key end

     0   :  { %s3081_s0 = inlined_call_operand.hbm [shape: f32[2,8,32], index: 0, kind: input, shape index: {}]   ;;  %s3082_s1 = inlined_call_operand.hbm [shape: f32[2,8,32], index: 1, kind: input, shape index: {}]   ;;  %s3083_s2 = inlined_call_operand.hbm [shape: f32[2,8,8], index: 2, kind: input, shape index: {}]   ;;  %s3084_s3 = inlined_call_operand.hbm [shape: f32[32,32], index: 3, kind: input, shape index: {}]   ;;  %s3085_s4 = inlined_call_operand.hbm [shape: f32[32,32], index: 4, kind: input, shape index: {}]   ;;  %s3086_s5 = inlined_call_operand.hbm [shape: f32[32,32], index: 5, kind: input, shape index: {}]   ;;  %s3087_s6 = inlined_call_operand.hbm [shape: f32[32,32], index: 6, kind: input, shape index: {}]   ;;  %s3088_s7 = inlined_call_operand.vmem [shape: f32[1,32], index: 7, kind: input, shape index: {}]   ;;  %s3089_s8 = inlined_call_operand.hbm [shape: f32[32,32], index: 8, kind: input, shape index: {}]   ;;  %s3090_s9 = inlined_call_operand.vmem [shape: f32[1,32], index: 9, kind: input, shape index: {}]   ;;  %s3091_s10 = inlined_call_operand.hbm [shape: f32[2,8,32], index: 10, kind: output, shape index: {}]  }
   0x1   :  { %3118 = sst [smem:[#allocation31_spill]] %s3082_s1 }
   0x2   :  { %3119 = sst [smem:[#allocation32_spill]] %s3084_s3 }
   0x3   :  { %3120 = sst [smem:[#allocation33_spill]] %s3085_s4 }
   0x4   :  { %3121 = sst [smem:[#allocation34_spill]] %s3086_s5 }
   0x5   :  { %3122 = sst [smem:[#allocation35_spill]] %s3090_s9 }
   0x6   :  { %3123 = sst [smem:[#allocation36_spill]] %s3091_s10 }
   0x7   :  { %15 = vsyncpa [#allocation3], 0 }
   0x8   :  { %17 = vsyncpa [#allocation3 + $0x1], 0 }
   0x9   :  { %18 = vsyncpa [#allocation6], 0 }
   0xa   :  { %20 = vsyncpa [#allocation6 + $0x1], 0 }
   0xb   :  { %21 = vsyncpa [#allocation9], 0 }
   0xc   :  { %22 = vsyncpa [#allocation12], 0 }
   0xd   :  { %23 = vsyncpa [#allocation15], 0 }
   0xe   :  { %24 = vsyncpa [#allocation4], 0 }
   0xf   :  { %26 = vsyncpa [#allocation4 + $0x1], 0  ;;  %s2579_s13 = smov 0   ;;  %s2581_s14 = smov 0  }
  0x10   :  { %s2583_s15 = smov 0   ;;  %s2585_s16 = smov 0  }
  0x11   :  { %s2587_s17 = smov 0   ;;  %s2589_s18 = smov 0  }
  0x12 LB: > { %3124 = sst [smem:[#allocation23_spill]] %s2482_s13  ;;  %s2610_s19 = sadd.s32 4294967295, %s2502_s18   ;;  %s2502_s18 = sphi %s2589_s18, %s32_s18   ;;  %s2498_s17 = sphi %s2587_s17, %s3173_s17   ;;  %s2494_s16 = sphi %s2585_s16, %s3172_s16   ;;  %s2490_s15 = sphi %s2583_s15, %s3176_s15   ;;  %s2486_s14 = sphi %s2581_s14, %s3175_s14   ;;  %s2482_s13 = sphi %s2579_s13, %s3174_s13  }
  0x13   : > { %3125 = sst [smem:[#allocation24_spill]] %s2494_s16  ;;  %p1807_p0 = scmp.ge.s32.totalorder %s2502_s18, 1 }
  0x14   : > { %3126 = sst [smem:[#allocation25_spill]] %s2498_s17  ;;  %p3102_p1 = scmp.eq.s32.totalorder %s2610_s19, 0 }
  0x15   : > { %3127 = sst [smem:[#allocation26_spill]] %s2502_s18  ;;  %p306_p2 = scmp.lt.s32.totalorder %s2502_s18, 3 }
  0x16   : > { %s2504_s21 = smov [#allocation8]   ;;  %s2505_s24 = smov [#allocation11]  }
  0x17   : > { %p2615_p3 = pnand %p1807_p0, %p306_p2  ;;  %s318_s22 = sshll.u32 %s2504_s21, 4  ;;  %s2619_s22 = int_to_ptr.vmem [resolvable:$true] %s318_s22 }
  0x18   : > { %s344_s25 = sshll.u32 %s2505_s24, 4  ;;  %s3130_s3 = sld [smem:[#allocation32_spill]]  ;;  %s2630_s25 = int_to_ptr.vmem [resolvable:$true] %s344_s25 }
  0x19   : > { %s3128_s20 = scalar_select %p2615_p3, 1, 0 }
  0x1a   : > { %p2048_p4 = pneg %p2615_p3 }
  0x1c   : > { %p2626_p6 = pnand %p2048_p4, %p3102_p1 }
  0x1e   : > { %s3129_s23 = scalar_select %p2626_p6, 1, 0 }
  0x1f   : > { %s2174_s28 = scalar_lea.hbm %s3130_s3, 512  ;;  %p2640_p8 = pneg %p2626_p6 }
  0x20   : > { %p2175_p7 = scmp.ne.s32.totalorder %s3130_s3, %s2174_s28  ;;  %p2181_p11 = scmp.lt.u32.totalorder %s2174_s28, %s3130_s3 }
  0x21   : > { %s3131_s11 = scalar_select %p2640_p8, 1, 0 }
  0x22   : > { %p2177_p9 = pnand %p2640_p8, %p2175_p7 }
  0x24   : > { %p2178_p10 = pneg %p2177_p9 }
  0x26   : > { %p2183_p12 = pnand %p2181_p11, %p2178_p10 }
  0x28   : > { %2186 = shalt.err (!%p2183_p12)
}
  0x29   : > { %s2187_s24 = scalar_lea.vmem %s2619_s22, 512  ;;  %p2195_p4 = scmp.lt.s32.totalorder %s2619_s22, %s2619_s22 }
  0x2a   : > { %p2188_p13 = scmp.ne.s32.totalorder %s2619_s22, %s2187_s24  ;;  %p2196_p5 = scmp.lt.s32.totalorder %s2187_s24, %s2187_s24 }
  0x2c   : > { %p2190_p0 = pnand %p2188_p13, %p2640_p8  ;;  %p2197_p7 = por %p2196_p5, %p2195_p4 }
  0x2e   : > { %p2191_p2 = pneg %p2190_p0 }
  0x30   : > { %p2198_p9 = pnand %p2197_p7, %p2191_p2 }
  0x32   : > { %2201 = shalt.err (!%p2198_p9)
}
  0x33   : > { %s3093_s26 = smov 128   ;;  %s3095_s27 = smov 8  }
  0x34   : > { %2051 = dma.hbm_to_vmem [thread:$0]  (!%p2626_p6), %s3130_s3, 512, %s2619_s22, [#allocation9], %s3093_s26, %s3093_s26, %s3095_s27  }
  0x35   : > { %s3132_s5 = sld [smem:[#allocation34_spill]] }
  0x3b   : > { %s2202_s21 = scalar_lea.hbm %s3132_s5, 512 }
  0x3c   : > { %p2203_p5 = scmp.ne.s32.totalorder %s3132_s5, %s2202_s21  ;;  %p2209_p12 = scmp.lt.u32.totalorder %s2202_s21, %s3132_s5 }
  0x3e   : > { %p2205_p10 = pnand %p2203_p5, %p2640_p8 }
  0x40   : > { %p2206_p11 = pneg %p2205_p10 }
  0x42   : > { %p2211_p13 = pnand %p2209_p12, %p2206_p11 }
  0x44   : > { %2214 = shalt.err (!%p2211_p13)
}
  0x45   : > { %s2215_s22 = scalar_lea.vmem %s2630_s25, 512  ;;  %p2223_p7 = scmp.lt.s32.totalorder %s2630_s25, %s2630_s25 }
  0x46   : > { %p2216_p0 = scmp.ne.s32.totalorder %s2630_s25, %s2215_s22  ;;  %p2224_p9 = scmp.lt.s32.totalorder %s2215_s22, %s2215_s22 }
  0x48   : > { %p2218_p2 = pnand %p2216_p0, %p2640_p8  ;;  %p2225_p5 = por %p2224_p9, %p2223_p7 }
  0x4a   : > { %p2219_p4 = pneg %p2218_p2 }
  0x4c   : > { %p2226_p10 = pnand %p2225_p5, %p2219_p4 }
  0x4e   : > { %2229 = shalt.err (!%p2226_p10)
}
  0x4f   : > { %2057 = dma.hbm_to_vmem [thread:$0]  (!%p2626_p6), %s3132_s5, 512, %s2630_s25, [#allocation12], %s3093_s26, %s3093_s26, %s3095_s27  }
  0x50   : > { %s1806_s16 = sadd.s32 4294967294, %s2502_s18   ;;  %s44_s28 = sadd.s32 1, %s2498_s17 }
  0x51   : > { %p46_p11 = scmp.ge.s32.totalorder %s44_s28, 2  ;;  %s53_s29 = sadd.s32 1, %s2490_s15 }
  0x52   : > { %p60_p12 = scmp.ne.s32.totalorder %s2490_s15, %s2486_s14  ;;  %p61_p13 = scmp.eq.s32.totalorder %s2502_s18, 0 }
  0x53   : > { %s3178_s28 = smov (%p46_p11, %s44_s28), 0  ;;  %p66_p2 = scmp.ne.s32.totalorder %s2486_s14, %s2482_s13 }
  0x54   : > { %3133 = sst [smem:[#allocation27_spill]] %s3178_s28  ;;  %p2698_p0 = por %p61_p13, %p60_p12 }
  0x55   : > { %s48_s25 = ssub.s32 %s2498_s17, %s3178_s28  ;;  %p293_p4 = scmp.eq.s32.totalorder %s2610_s19, 1 }
  0x56   : > { %p51_p7 = scmp.eq.s32.totalorder %s48_s25, 0  ;;  %p2709_p9 = por %p3102_p1, %p66_p2 }
  0x57   : > { %p2713_p5 = por %p293_p4, %p60_p12  ;;  %p299_p10 = scmp.eq.s32.totalorder %s1806_s16, 1 }
  0x58   : > { %s3135_s12 = scalar_select %p2709_p9, 1, 0 }
  0x59   : > { %s3136_s21 = scalar_select %p2713_p5, 1, 0 }
  0x5a   : > { %s2718_s24 = scalar_select %p51_p7, %s2490_s15, %s53_s29  }
  0x5b   : > { %3137 = sst [smem:[#allocation28_spill]] %s3136_s21  ;;  %p2720_p11 = por %p299_p10, %p66_p2 }
  0x5c   : > { %3138 = sst [smem:[#allocation29_spill]] %s2718_s24  ;;  %p2083_p13 = scmp.lt.s32.totalorder %s2502_s18, 2 }
  0x5d   : > { %s3139_s22 = scalar_select %p2720_p11, 1, 0 }
  0x5e   : > { %s3097_s9 = sand.u32 1, %s2490_s15   ;;  %s2727_s10 = sshll.u32 %s2498_s17, 7 }
  0x5f   : > { %3140 = sst [smem:[#allocation30_spill]] %s3139_s22  ;;  %s2731_s25 = sshll.u32 %s3097_s9, 3 }
  0x60   : > { %p2735_p12 = pnand %p2083_p13, %p2698_p0  ;;  %s409_s16 = sand.u32 1, %s2502_s18  }
  0x61   : > { %s3142_s1 = sld [smem:[#allocation31_spill]]  ;;  %s413_s5 = scalar_lea.vmem [#allocation5], %s2731_s25 }
  0x62   : > { %s3141_s26 = scalar_select %p2735_p12, 1, 0 }
  0x63   : > { %s420_s9 = sshll.u32 %s413_s5, 4  ;;  %s2749_s30 = scalar_lea.sflag [#allocation6], %s409_s16  ;;  %s2747_s9 = int_to_ptr.vmem [resolvable:$true] %s420_s9 }
  0x64   : > { %p2755_p2 = pneg %p2735_p12 }
  0x66   : > { %s3143_s17 = scalar_select %p2755_p2, 1, 0 }
  0x67   : > { %s2744_s3 = scalar_lea.hbm %s3142_s1, %s2727_s10  ;;  %s2235_s24 = scalar_lea.hbm %s3142_s1, 256 }
  0x68   : > { %s2230_s28 = scalar_lea.hbm %s2744_s3, 128  ;;  %p2236_p10 = scmp.lt.u32.totalorder %s2744_s3, %s3142_s1 }
  0x69   : > { %p2231_p0 = scmp.ne.s32.totalorder %s2744_s3, %s2230_s28  ;;  %p2237_p13 = scmp.lt.u32.totalorder %s2235_s24, %s2230_s28 }
  0x6a   : > { %p2239_p11 = scmp.lt.u32.totalorder %s2230_s28, %s2744_s3 }
  0x6b   : > { %p2233_p4 = pnand %p2755_p2, %p2231_p0  ;;  %p2238_p1 = por %p2237_p13, %p2236_p10 }
  0x6d   : > { %p2234_p7 = pneg %p2233_p4  ;;  %p2240_p5 = por %p2239_p11, %p2238_p1 }
  0x6f   : > { %p2241_p9 = pnand %p2240_p5, %p2234_p7 }
  0x71   : > { %2244 = shalt.err (!%p2241_p9)
}
  0x72   : > { %s2245_s16 = scalar_lea.vmem %s2747_s9, 128  ;;  %s2508_s27 = smov [#allocation5]  }
  0x73   : > { %p2246_p0 = scmp.ne.s32.totalorder %s2747_s9, %s2245_s16  ;;  %s2250_s29 = sshll.u32 %s2508_s27, 4  ;;  %s2251_s29 = int_to_ptr.vmem [resolvable:$false] %s2250_s29 }
  0x74   : > { %s2252_s18 = scalar_lea.vmem %s2251_s29, 256  ;;  %p2253_p6 = scmp.lt.s32.totalorder %s2747_s9, %s2251_s29 }
  0x75   : > { %p2248_p4 = pnand %p2246_p0, %p2755_p2  ;;  %p2254_p8 = scmp.lt.s32.totalorder %s2252_s18, %s2245_s16 }
  0x77   : > { %p2249_p3 = pneg %p2248_p4  ;;  %p2255_p10 = por %p2254_p8, %p2253_p6 }
  0x79   : > { %p2256_p13 = pnand %p2255_p10, %p2249_p3 }
  0x7b   : > { %2259 = shalt.err (!%p2256_p13)
}
  0x7c   : > { %2070 = dma.hbm_to_vmem [thread:$0]  (!%p2735_p12), %s2744_s3, 128, %s2747_s9, %s2749_s30  }
  0x7d   : > { %s2509_s28 = smov [#allocation10]   ;;  %s2510_s5 = smov [#allocation13]  }
  0x7e   : > { %s331_s24 = sshll.u32 %s2509_s28, 4  ;;  %s357_s1 = sshll.u32 %s2510_s5, 4  ;;  %s332_s24 = int_to_ptr.vmem [resolvable:$true] %s331_s24  ;;  %s358_s1 = int_to_ptr.vmem [resolvable:$true] %s357_s1 }
  0x7f   : > { %s3144_s4 = sld [smem:[#allocation33_spill]]  ;;  %p3145_p3 = scmp.ne.s32.totalorder %s3131_s11, 0 }
  0x85   : > { %s2260_s29 = scalar_lea.hbm %s3144_s4, 512 }
  0x86   : > { %p2261_p1 = scmp.ne.s32.totalorder %s3144_s4, %s2260_s29  ;;  %p2267_p9 = scmp.lt.u32.totalorder %s2260_s29, %s3144_s4 }
  0x88   : > { %p2263_p6 = pnand %p2261_p1, %p3145_p3 }
  0x8a   : > { %p2264_p8 = pneg %p2263_p6 }
  0x8c   : > { %p2269_p5 = pnand %p2267_p9, %p2264_p8 }
  0x8e   : > { %2272 = shalt.err (!%p2269_p5)
}
  0x8f   : > { %s2273_s3 = scalar_lea.vmem %s332_s24, 512  ;;  %p2281_p4 = scmp.lt.s32.totalorder %s332_s24, %s332_s24 }
  0x90   : > { %p2274_p11 = scmp.ne.s32.totalorder %s332_s24, %s2273_s3  ;;  %p2282_p10 = scmp.lt.s32.totalorder %s2273_s3, %s2273_s3 }
  0x92   : > { %p2276_p7 = pnand %p2274_p11, %p3145_p3  ;;  %p2283_p13 = por %p2282_p10, %p2281_p4 }
  0x94   : > { %p2277_p0 = pneg %p2276_p7 }
  0x96   : > { %p2284_p12 = pnand %p2283_p13, %p2277_p0 }
  0x98   : > { %2287 = shalt.err (!%p2284_p12)
}
  0x99   : > { %p3146_p1 = scmp.ne.s32.totalorder %s3129_s23, 0  ;;  %s3147_s22 = smov 8  }
  0x9a   : > { %s3148_s9 = smov 128   ;;  %s2288_s27 = scalar_lea.hbm %s3087_s6, 512 }
  0x9b   : > { %2054 = dma.hbm_to_vmem [thread:$0]  (!%p3146_p1), %s3144_s4, 512, %s332_s24, [#allocation9], %s3148_s9, %s3148_s9, %s3147_s22  }
  0x9c   : > { %p2289_p6 = scmp.ne.s32.totalorder %s3087_s6, %s2288_s27  ;;  %p2295_p9 = scmp.lt.u32.totalorder %s2288_s27, %s3087_s6 }
  0x9e   : > { %p2291_p12 = pnand %p2289_p6, %p3145_p3 }
  0xa0   : > { %p2292_p8 = pneg %p2291_p12 }
  0xa2   : > { %p2297_p5 = pnand %p2295_p9, %p2292_p8 }
  0xa4   : > { %2300 = shalt.err (!%p2297_p5)
}
  0xa5   : > { %s2301_s13 = scalar_lea.vmem %s358_s1, 512  ;;  %p2309_p4 = scmp.lt.s32.totalorder %s358_s1, %s358_s1 }
  0xa6   : > { %p2302_p11 = scmp.ne.s32.totalorder %s358_s1, %s2301_s13  ;;  %p2310_p10 = scmp.lt.s32.totalorder %s2301_s13, %s2301_s13 }
  0xa8   : > { %p2304_p7 = pnand %p2302_p11, %p3145_p3  ;;  %p2311_p13 = por %p2310_p10, %p2309_p4 }
  0xaa   : > { %p2305_p0 = pneg %p2304_p7 }
  0xac   : > { %p2312_p2 = pnand %p2311_p13, %p2305_p0 }
  0xae   : > { %2315 = shalt.err (!%p2312_p2)
}
  0xaf   : > { %2060 = dma.hbm_to_vmem [thread:$0]  (!%p3146_p1), %s3087_s6, 512, %s358_s1, [#allocation12], %s3148_s9, %s3148_s9, %s3147_s22  }
  0xb0   : > { %s2511_s28 = smov [#allocation14]   ;;  %s2316_s16 = scalar_lea.hbm %s3089_s8, 512 }
  0xb1   : > { %s373_s5 = sshll.u32 %s2511_s28, 4  ;;  %p2317_p2 = scmp.ne.s32.totalorder %s3089_s8, %s2316_s16  ;;  %s374_s5 = int_to_ptr.vmem [resolvable:$true] %s373_s5 }
  0xb2   : > { %p2323_p8 = scmp.lt.u32.totalorder %s2316_s16, %s3089_s8 }
  0xb3   : > { %p2319_p6 = pnand %p2317_p2, %p3145_p3 }
  0xb5   : > { %p2320_p12 = pneg %p2319_p6 }
  0xb7   : > { %p2325_p9 = pnand %p2323_p8, %p2320_p12 }
  0xb9   : > { %2328 = shalt.err (!%p2325_p9)
}
  0xba   : > { %s2329_s1 = scalar_lea.vmem %s374_s5, 512  ;;  %p2337_p0 = scmp.lt.s32.totalorder %s374_s5, %s374_s5 }
  0xbb   : > { %p2330_p5 = scmp.ne.s32.totalorder %s374_s5, %s2329_s1  ;;  %p2338_p4 = scmp.lt.s32.totalorder %s2329_s1, %s2329_s1 }
  0xbd   : > { %p2332_p11 = pnand %p2330_p5, %p3145_p3  ;;  %p2339_p10 = por %p2338_p4, %p2337_p0 }
  0xbf   : > { %p2333_p7 = pneg %p2332_p11 }
  0xc1   : > { %p2340_p13 = pnand %p2339_p10, %p2333_p7 }
  0xc3   : > { %2343 = shalt.err (!%p2340_p13)
}
  0xc4   : > { %2063 = dma.hbm_to_vmem [thread:$0]  (!%p3146_p1), %s3089_s8, 512, %s374_s5, [#allocation15], %s3148_s9, %s3148_s9, %s3147_s22  }
  0xc5   : > { %s2846_s28 = scalar_lea.hbm %s3081_s0, %s2727_s10  ;;  %s394_s23 = scalar_lea.vmem [#allocation2], %s2731_s25 }
  0xc6   : > { %s402_s27 = sshll.u32 %s394_s23, 4  ;;  %s3149_s29 = sand.u32 1, %s2490_s15   ;;  %s403_s27 = int_to_ptr.vmem [resolvable:$true] %s402_s27 }
  0xc7   : > { %s391_s16 = scalar_lea.sflag [#allocation3], %s3149_s29  ;;  %s2344_s18 = scalar_lea.hbm %s2846_s28, 128 }
  0xc8   : > { %p2345_p3 = scmp.ne.s32.totalorder %s2846_s28, %s2344_s18  ;;  %p3150_p2 = scmp.ne.s32.totalorder %s3143_s17, 0 }
  0xc9   : > { %s2349_s5 = scalar_lea.hbm %s3081_s0, 256  ;;  %p2350_p1 = scmp.lt.u32.totalorder %s2846_s28, %s3081_s0 }
  0xca   : > { %p2347_p6 = pnand %p2345_p3, %p3150_p2  ;;  %p2351_p8 = scmp.lt.u32.totalorder %s2349_s5, %s2344_s18 }
  0xcb   : > { %p2353_p5 = scmp.lt.u32.totalorder %s2344_s18, %s2846_s28 }
  0xcc   : > { %p2348_p12 = pneg %p2347_p6  ;;  %p2352_p9 = por %p2351_p8, %p2350_p1 }
  0xce   : > { %p2354_p11 = por %p2353_p5, %p2352_p9 }
  0xd0   : > { %p2355_p7 = pnand %p2354_p11, %p2348_p12 }
  0xd2   : > { %2358 = shalt.err (!%p2355_p7)
}
  0xd3   : > { %s2359_s1 = scalar_lea.vmem %s403_s27, 128  ;;  %s2512_s4 = smov [#allocation2]  }
  0xd4   : > { %p2360_p0 = scmp.ne.s32.totalorder %s403_s27, %s2359_s1  ;;  %s2364_s24 = sshll.u32 %s2512_s4, 4  ;;  %s2365_s24 = int_to_ptr.vmem [resolvable:$false] %s2364_s24 }
  0xd5   : > { %s2366_s11 = scalar_lea.vmem %s2365_s24, 256  ;;  %p2367_p13 = scmp.lt.s32.totalorder %s403_s27, %s2365_s24 }
  0xd6   : > { %p2362_p4 = pnand %p2360_p0, %p3150_p2  ;;  %p2368_p3 = scmp.lt.s32.totalorder %s2366_s11, %s2359_s1 }
  0xd8   : > { %p2363_p10 = pneg %p2362_p4  ;;  %p2369_p6 = por %p2368_p3, %p2367_p13 }
  0xda   : > { %p2370_p1 = pnand %p2369_p6, %p2363_p10 }
  0xdc   : > { %2373 = shalt.err (!%p2370_p1)
}
  0xdd   : > { %p3151_p8 = scmp.ne.s32.totalorder %s3141_s26, 0  ;;  %s2872_s29 = scalar_lea.hbm %s3083_s2, %s2727_s10 }
  0xde   : > { %s431_s18 = scalar_lea.vmem [#allocation7], %s2731_s25  ;;  %s2374_s9 = scalar_lea.hbm %s2872_s29, 128 }
  0xdf   : > { %2067 = dma.hbm_to_vmem [thread:$0]  (!%p3151_p8), %s2846_s28, 128, %s403_s27, %s391_s16  }
  0xe0   : > { %s439_s22 = sshll.u32 %s431_s18, 4  ;;  %p2375_p12 = scmp.ne.s32.totalorder %s2872_s29, %s2374_s9  ;;  %s440_s22 = int_to_ptr.vmem [resolvable:$true] %s439_s22 }
  0xe1   : > { %s2379_s28 = scalar_lea.hbm %s3083_s2, 256  ;;  %p2380_p11 = scmp.lt.u32.totalorder %s2872_s29, %s3083_s2 }
  0xe2   : > { %p2377_p9 = pnand %p2375_p12, %p3150_p2  ;;  %p2381_p7 = scmp.lt.u32.totalorder %s2379_s28, %s2374_s9 }
  0xe3   : > { %p2383_p4 = scmp.lt.u32.totalorder %s2374_s9, %s2872_s29 }
  0xe4   : > { %p2378_p5 = pneg %p2377_p9  ;;  %p2382_p0 = por %p2381_p7, %p2380_p11 }
  0xe6   : > { %p2384_p10 = por %p2383_p4, %p2382_p0 }
  0xe8   : > { %p2385_p13 = pnand %p2384_p10, %p2378_p5 }
  0xea   : > { %2388 = shalt.err (!%p2385_p13)
}
  0xeb   : > { %s2389_s10 = scalar_lea.vmem %s440_s22, 128  ;;  %s2513_s25 = smov [#allocation7]  }
  0xec   : > { %p2390_p3 = scmp.ne.s32.totalorder %s440_s22, %s2389_s10  ;;  %s2394_s13 = sshll.u32 %s2513_s25, 4  ;;  %s2395_s13 = int_to_ptr.vmem [resolvable:$false] %s2394_s13 }
  0xed   : > { %s2396_s1 = scalar_lea.vmem %s2395_s13, 256  ;;  %p2397_p12 = scmp.lt.s32.totalorder %s440_s22, %s2395_s13 }
  0xee   : > { %p2392_p6 = pnand %p2390_p3, %p3150_p2  ;;  %p2398_p9 = scmp.lt.s32.totalorder %s2396_s1, %s2389_s10 }
  0xf0   : > { %p2393_p1 = pneg %p2392_p6  ;;  %p2399_p8 = por %p2398_p9, %p2397_p12 }
  0xf2   : > { %p2400_p7 = pnand %p2399_p8, %p2393_p1 }
  0xf4   : > { %2403 = shalt.err (!%p2400_p7)
}
  0xf5   : > { %p3152_p11 = scmp.ne.s32.totalorder %s3141_s26, 0  ;;  %p3153_p5 = scmp.ne.s32.totalorder %s3128_s20, 0 }
  0xf6   : > { %s2896_s17 = sand.u32 (!%p3153_p5), 1, %s2486_s14   ;;  %p3154_p2 = scmp.ne.s32.totalorder (!%p3153_p5), %s3135_s12, 0 }
  0xf7   : > { %2073 = dma.hbm_to_vmem [thread:$0]  (!%p3152_p11), %s2872_s29, 128, %s440_s22, %s2749_s30  }
  0xf8   : > { %448 = sbr.rel (%p3153_p5) target bundleno = 1706 (0x6aa), region = 60  ;;  %s2899_s4 = sshll.u32 (!%p3153_p5), %s2896_s17, 3 }
  0xf9   : > { %s451_s24 = scalar_lea.sflag (!%p3153_p5), [#allocation3], %s2896_s17  ;;  %s454_s11 = scalar_lea.vmem (!%p3153_p5), [#allocation2], %s2899_s4 }
  0xff   : > { %2457 = dma.done.wait (%p3154_p2), %s451_s24, 128  }
 0x100   : > { %2459 = vsyncadd (%p3154_p2), %s451_s24, 4294967168  ;;  %s459_s20 = sand.u32 1, %s2610_s19   ;;  %s463_s30 = scalar_lea.vmem [#allocation5], %s2899_s4 }
 0x101   : > { %s460_s26 = scalar_lea.sflag [#allocation6], %s459_s20 }
 0x102   : > { %2461 = dma.done.wait (%p3154_p2), %s460_s26, 256  }
 0x103   : > { %2463 = vsyncadd (%p3154_p2), %s460_s26, 4294967040  ;;  %s472_s21 = scalar_lea.vmem [#allocation7], %s2899_s4  ;;  %p3155_p8 = scmp.eq.s32.totalorder %s2610_s19, 0 }
 0x105   : > { %2465 = dma.done.wait (%p3155_p8), [#allocation9], 1024   ;;  %p3156_p0 = pmov %p3155_p8 }
 0x107   : > { %2467 = vsyncadd (%p3156_p0), [#allocation9], 4294966272  ;;  %p3157_p4 = pmov %p3156_p0 }
 0x108   : > { %p3158_p10 = pmov %p3156_p0 }
 0x109   : > { %2469 = dma.done.wait (%p3157_p4), [#allocation12], 1024  }
 0x10a   : > { %2471 = vsyncadd (%p3158_p10), [#allocation12], 4294966272  ;;  %p3159_p13 = pmov %p3156_p0 }
 0x10b   : > { %p3160_p3 = pmov %p3156_p0 }
 0x10c   : > { %2473 = dma.done.wait (%p3159_p13), [#allocation15], 512  }
 0x10d   : > { %2475 = vsyncadd (%p3160_p3), [#allocation15], 4294966784  ;;  %v2514_v0 = vmov 0.0|0.0   ;;  %vm2515_vm0 = vmmov 0   ;;  %v2516_v1 = vmov 0.0   ;;  %v619_v2 = vld [vmem:[#allocation10] sm:$0xff] }
 0x10e   : > { %1996 = vmatprep.subr.bf16.mxu1 %v2514_v0  ;;  %1990 = vmatprep.subr.bf16.mxu0 %v2514_v0  ;;  %v620_v3 = vld [vmem:[#allocation10 + $0x8] sm:$0xff]  ;;  %v541_v4 = vld [vmem:[#allocation8] sm:$0xff]  ;;  %v621_v7 = vld [vmem:[#allocation10 + $0x10] sm:$0xff]  ;;  %vm545_vm1 = vcmask 261120   ;;  %vm858_vm2 = vcmask 64512   ;;  %s2517_s19 = smov 112  }
 0x10f   : > { %1914 = vmatprep.mubr.msk.f32.mxu1 %vm2515_vm0, %v2516_v1  ;;  %1903 = vmatprep.mubr.msk.f32.mxu0 %vm2515_vm0, %v2516_v1  ;;  %v1997_v5 = vpack.c.bf16 %v620_v3, %v619_v2  ;;  %v542_v6 = vld [vmem:[#allocation8 + $0x8] sm:$0xff]  ;;  %v622_v8 = vld [vmem:[#allocation10 + $0x18] sm:$0xff]  ;;  %v543_v10 = vld [vmem:[#allocation8 + $0x10] sm:$0xff]  ;;  %s2518_s12 = smov 120   ;;  %s2519_s23 = smov 104   ;;  %vm1528_vm3 = vcmask 130048  }
 0x110   : > { %v1991_v9 = vpack.c.bf16 %v542_v6, %v541_v4  ;;  %v544_v11 = vld [vmem:[#allocation8 + $0x18] sm:$0xff]  ;;  %v2000_v12 = vpack.c.bf16 %v622_v8, %v621_v7  ;;  %v770_v14 = vld [vmem:[#allocation13] sm:$0xff]  ;;  %v771_v15 = vld [vmem:[#allocation13 + $0x8] sm:$0xff]  ;;  %s2520_s29 = smov 8   ;;  %s2521_s18 = smov 16   ;;  %vm1530_vm4 = vcmask 195584  }
 0x111   : > { %1998 = vmatpush3.bf16.msra.mxu1 %v1997_v5  ;;  %v1994_v13 = vpack.c.bf16 %v544_v11, %v543_v10  ;;  %v540_v16 = vld [vmem:[%s463_s30] sm:$0xff]  ;;  %v2009_v17 = vpack.c.bf16 %v771_v15, %v770_v14  ;;  %v539_v18 = vld [vmem:[%s454_s11] sm:$0xff]  ;;  %s2522_s22 = smov 24   ;;  %s3161_s3 = sld [smem:[#allocation24_spill]] }
 0x112   : > { %1992 = vmatpush3.bf16.msra.mxu0 %v1991_v9  ;;  %1999 = vmatprep.subr.bf16.mxu1 %v2514_v0  ;;  %v772_v19 = vld [vmem:[#allocation13 + $0x10] sm:$0xff]  ;;  %v773_v20 = vld [vmem:[#allocation13 + $0x18] sm:$0xff]  ;;  %v696_v22 = vld [vmem:[#allocation11] sm:$0xff]  ;;  %s3162_s28 = sld [smem:[#allocation28_spill]]  ;;  %s538_s13 = scalar_lea.vmem [#allocation16], %s2899_s4 }
 0x113   : > { %1993 = vmatprep.subr.bf16.mxu0 %v2514_v0  ;;  %v2012_v21 = vpack.c.bf16 %v773_v20, %v772_v19  ;;  %v697_v23 = vld [vmem:[#allocation11 + $0x8] sm:$0xff]  ;;  %v698_v24 = vld [vmem:[#allocation11 + $0x10] sm:$0xff]  ;;  %v699_v26 = vld [vmem:[#allocation11 + $0x18] sm:$0xff]  ;;  %s3163_s10 = sld [smem:[#allocation35_spill]]  ;;  %s1633_s1 = sshll.u32 %s538_s13, 4  ;;  %s3033_s1 = int_to_ptr.vmem [resolvable:$true] %s1633_s1 }
 0x114   : > { %v2003_v25 = vpack.c.bf16 %v697_v23, %v696_v22  ;;  %v2006_v27 = vpack.c.bf16 %v699_v26, %v698_v24  ;;  %v857_v42 = vld [vmem:[%s472_s21] sm:$0xff]  ;;  %s3164_s20 = sld [smem:[#allocation36_spill]]  ;;  %s1619_s30 = scalar_lea.sflag [#allocation4], %s2896_s17 }
 0x115   : > { %2001 = vmatpush3.bf16.msra.mxu1 %v2000_v12  ;;  %s2404_s21 = scalar_lea.vmem %s3033_s1, 128  ;;  %s2523_s4 = smov [#allocation16]  }
 0x116   : > { %1995 = vmatpush3.bf16.msra.mxu0 %v1994_v13  ;;  %2008 = vmatprep.subr.bf16.mxu1 %v2514_v0  ;;  %p2405_p6 = scmp.ne.s32.totalorder %s3033_s1, %s2404_s21 }
 0x117   : > { %2002 = vmatprep.subr.bf16.mxu0 %v2514_v0  ;;  %s1851_s25 = sshll.u32 %s3161_s3, 7 }
 0x118   : > { %1915 = vmatmul.mubr.msk.f32.vlgmr.msra.gmra.mrb[0].mxu1 %vm545_vm1, %v540_v16  ;;  %p3165_p1 = scmp.ne.s32.totalorder %s3162_s28, 0 }
 0x119   : > { %1904 = vmatmul.mubr.msk.f32.vlgmr.msra.gmra.mrb[0].mxu0 %vm545_vm1, %v539_v18  ;;  %2010 = vmatpush3.bf16.msra.mxu1 %v2009_v17 }
 0x11a   : > { %2011 = vmatprep.subr.bf16.mxu1 %v2514_v0  ;;  %1936 = vmatprep.mubr.msk.f32.mxu1 %vm2515_vm0, %v2516_v1  ;;  %s3031_s26 = scalar_lea.hbm %s3164_s20, %s1851_s25  ;;  %p2406_p12 = pnand %p2405_p6, %p3165_p1 }
 0x11b   : > { %1925 = vmatprep.mubr.msk.f32.mxu0 %vm2515_vm0, %v2516_v1  ;;  %2004 = vmatpush3.bf16.msra.mxu0 %v2003_v25 }
 0x11c   : > { %2005 = vmatprep.subr.bf16.mxu0 %v2514_v0  ;;  %p2407_p9 = pneg %p2406_p12 }
 0x11d   : > { %2013 = vmatpush3.bf16.msra.mxu1 %v2012_v21 }
 0x11e   : > { %1939 = vmatprep.subr.mxu1 %v2516_v1 }
 0x11f   : > { %2007 = vmatpush3.bf16.msra.mxu0 %v2006_v27 }
 0x120   : > { %1937 = vmatmul.mubr.msk.f32.vlgmr.msra.gmra.mrb[2].mxu1 %vm545_vm1, %v539_v18  ;;  %1949 = vmatprep.subr.mxu0 %v2516_v1 }
 0x121   : > { %1941 = vmatprep.mubr.msk.f32.mxu1 %vm2515_vm0, %v2516_v1 }
 0x122   : > { %1926 = vmatmul.mubr.msk.f32.vlgmr.msra.gmra.mrb[2].mxu0 %vm545_vm1, %v540_v16 }
 0x123   : > { %1951 = vmatprep.mubr.msk.f32.mxu0 %vm2515_vm0, %v2516_v1 }
 0x1eb   : > { %v692_v28 = vpop.f32.mrb[0].mxu1 }
 0x1ec   : > { %1187 = vrot.lane.b32.xlu1 %v692_v28, %s2517_s19  ;;  %1021 = vrot.lane.b32.xlu0 %v692_v28, %s2518_s12  ;;  %v1916_v29 = vpop.f32.mrb[1].mxu1  ;;  %v615_v30 = vpop.f32.mrb[0].mxu0 }
 0x1ed   : > { %1940 = vmatpush3.xpose.msk.msra.mxu1 %vm858_vm2, %v692_v28  ;;  %v1905_v31 = vpop.f32.mrb[1].mxu0 }
 0x1ee   : > { %1944 = vmatprep.subr.mxu1 %v2516_v1 }
 0x1f0   : > { %1942 = vmatmul.mubr.msk.f32.vlgmr.msra.gmra.mrb[4].mxu1 %vm858_vm2, %v615_v30  ;;  %1185 = vrot.lane.b32.xlu1 %v615_v30, %s2517_s19 }
 0x1f1   : > { %1019 = vrot.lane.b32.xlu0 %v615_v30, %s2518_s12  ;;  %1946 = vmatprep.mubr.msk.f32.mxu1 %vm2515_vm0, %v2516_v1 }
 0x1f3   : > { %v2965_v32 = vpop.f32.mrb[2].mxu1 }
 0x1f4   : > { %1350 = vrot.lane.b32.xlu1 %v615_v30, %s2519_s23  ;;  %v1938_v33 = vpop.f32.mrb[3].mxu1 }
 0x1f5   : > { %1352 = vrot.lane.b32.xlu0 %v692_v28, %s2519_s23  ;;  %v2969_v34 = vpop.f32.mrb[2].mxu0 }
 0x1f6   : > { %v1927_v35 = vpop.f32.mrb[3].mxu0  ;;  %1945 = vmatpush3.msra.mxu1 %v2969_v34 }
 0x1f7   : > { %1954 = vmatprep.subr.mxu1 %v2516_v1  ;;  %v1533_v35 = vld [vmem:[#allocation14] sm:$0xff] }
 0x25e   : > { %v1022_v36 = vpop.permute.xlu0 %1021  ;;  %v1188_v37 = vpop.permute.xlu1 %1187 }
 0x25f   : > { %1950 = vmatpush3.xpose.msk.msra.mxu0 %vm858_vm2, %v1022_v36  ;;  %v1534_v36 = vld [vmem:[#allocation14 + $0x8] sm:$0xff] }
 0x260   : > { %1959 = vmatprep.subr.mxu0 %v2516_v1 }
 0x262   : > { %v1186_v39 = vpop.permute.xlu1 %1185 }
 0x263   : > { %v1020_v38 = vpop.permute.xlu0 %1019 }
 0x264   : > { %1952 = vmatmul.mubr.msk.f32.vlgmr.msra.gmra.mrb[4].mxu0 %vm858_vm2, %v1020_v38  ;;  %v1535_v38 = vld [vmem:[#allocation14 + $0x10] sm:$0xff] }
 0x265   : > { %1960 = vmatpush3.xpose.msk.msra.mxu0 %vm858_vm2, %v1188_v37  ;;  %1961 = vmatprep.mubr.msk.f32.mxu0 %vm2515_vm0, %v2516_v1  ;;  %v2015_v37 = vpack.c.bf16 %v1534_v36, %v1533_v35 }
 0x266   : > { %1969 = vmatprep.subr.mxu0 %v2516_v1  ;;  %v1351_v41 = vpop.permute.xlu1 %1350 }
 0x267   : > { %v1353_v40 = vpop.permute.xlu0 %1352 }
 0x268   : > { %1962 = vmatmul.mubr.msk.f32.vlgmr.msra.gmra.mrb[6].mxu0 %vm858_vm2, %v1186_v39  ;;  %v1536_v39 = vld [vmem:[#allocation14 + $0x18] sm:$0xff] }
 0x269   : > { %1970 = vmatpush3.xpose.msk.msra.mxu0 %vm858_vm2, %v1353_v40  ;;  %1971 = vmatprep.mubr.msk.f32.mxu0 %vm2515_vm0, %v2516_v1  ;;  %v2018_v40 = vpack.c.bf16 %v1536_v39, %v1535_v38 }
 0x26a   : > { %2014 = vmatprep.subr.bf16.mxu0 %v2514_v0 }
 0x26c   : > { %1972 = vmatmul.mubr.msk.f32.vlgmr.msra.gmra.mrb[8].mxu0 %vm858_vm2, %v1351_v41 }
 0x26d   : > { %1987 = vmatprep.mubr.msk.f32.mxu0 %vm2515_vm0, %v2516_v1  ;;  %2016 = vmatpush3.bf16.msra.mxu0 %v2015_v37 }
 0x26e   : > { %2017 = vmatprep.subr.bf16.mxu0 %v2514_v0  ;;  %v1833_v0 = vld [vmem:[%s3088_s7] ss:$0 sm:$0xff] }
 0x271   : > { %2019 = vmatpush3.bf16.msra.mxu0 %v2018_v40 }
 0x2c3   : > { %v931_v43 = vpop.f32.mrb[4].mxu1 }
 0x2c4   : > { %v932_v44 = vadd.f32 %v931_v43, %v857_v42  ;;  %v1943_v45 = vpop.f32.mrb[5].mxu1 }
 0x2c6   : > { %v935_v46 = vsel %vm858_vm2, %v932_v44, -inf }
 0x2c7   : > { %936 = vmax.xlane.f32.xlu0 %v935_v46  ;;  %v848_v46 = vadd.f32 %v1833_v0, %v2965_v32 }
 0x337   : > { %v1093_v47 = vpop.f32.mrb[4].mxu0 }
 0x338   : > { %v1094_v48 = vadd.f32 %v1093_v47, %v857_v42  ;;  %v1953_v49 = vpop.f32.mrb[5].mxu0  ;;  %v1835_v47 = vmul.f32 -1.442695, %v848_v46 }
 0x33a   : > { %v1097_v50 = vsel %vm858_vm2, %v1094_v48, -inf }
 0x33b   : > { %1098 = vmax.xlane.f32.xlu1 %v1097_v50  ;;  %v1259_v51 = vpop.f32.mrb[6].mxu0 }
 0x33c   : > { %v1260_v52 = vadd.f32 %v1259_v51, %v857_v42  ;;  %v1963_v53 = vpop.f32.mrb[7].mxu0 }
 0x33e   : > { %v1263_v54 = vsel %vm858_vm2, %v1260_v52, -inf }
 0x33f   : > { %1264 = vmax.xlane.f32.xlu0 %v1263_v54  ;;  %v1424_v55 = vpop.f32.mrb[8].mxu0 }
 0x340   : > { %v1425_v56 = vadd.f32 %v1424_v55, %v857_v42  ;;  %v1973_v57 = vpop.f32.mrb[9].mxu0 }
 0x341   : > { %v1848_v57 = vld [vmem:[%s3163_s10] ss:$0 sm:$0xff] }
 0x342   : > { %v1428_v58 = vsel %vm858_vm2, %v1425_v56, -inf }
 0x343   : > { %1429 = vmax.xlane.f32.xlu0 %v1428_v58 }
 0x34c   : > { %1109 = vrot.lane.b32.xlu1 %v2969_v34, %s2518_s12 }
 0x354   : > { %v937_v59 = vpop.xlane.xlu0 %936 }
 0x355   : > { %v938_v60 = vsub.f32 %v932_v44, %v937_v59 }
 0x357   : > { %v939_v61 = vmul.f32 1.442695, %v938_v60 }
 0x359   : > { %2154 = vpow2.f32 %v939_v61 }
 0x363   : > { %v2155_v62 = vpop.eup %2154 }
 0x364   : > { %v941_v63 = vsel %vm858_vm2, %v2155_v62, 0.0 }
 0x370   : > { %942 = vadd.xlane.f32.xlu1 %v941_v63 }
 0x3c8   : > { %v1099_v2 = vpop.xlane.xlu1 %1098 }
 0x3c9   : > { %v1100_v3 = vsub.f32 %v1094_v48, %v1099_v2 }
 0x3cb   : > { %v1101_v4 = vmul.f32 1.442695, %v1100_v3 }
 0x3cc   : > { %v1265_v5 = vpop.xlane.xlu0 %1264  ;;  %v1110_v17 = vpop.permute.xlu1 %1109 }
 0x3cd   : > { %2156 = vpow2.f32 %v1101_v4  ;;  %v1266_v6 = vsub.f32 %v1260_v52, %v1265_v5 }
 0x3cf   : > { %v1267_v7 = vmul.f32 1.442695, %v1266_v6 }
 0x3d0   : > { %v1430_v8 = vpop.xlane.xlu0 %1429 }
 0x3d1   : > { %2158 = vpow2.f32 %v1267_v7  ;;  %v1431_v9 = vsub.f32 %v1425_v56, %v1430_v8 }
 0x3d3   : > { %v1432_v10 = vmul.f32 1.442695, %v1431_v9 }
 0x3d5   : > { %2160 = vpow2.f32 %v1432_v10 }
 0x3d7   : > { %v2157_v11 = vpop.eup %2156 }
 0x3d8   : > { %v1103_v12 = vsel %vm858_vm2, %v2157_v11, 0.0 }
 0x3d9   : > { %1104 = vadd.xlane.f32.xlu0 %v1103_v12 }
 0x3db   : > { %v2159_v13 = vpop.eup %2158 }
 0x3dc   : > { %v1269_v14 = vsel %vm858_vm2, %v2159_v13, 0.0 }
 0x3dd   : > { %1270 = vadd.xlane.f32.xlu1 %v1269_v14 }
 0x3df   : > { %v2161_v15 = vpop.eup %2160 }
 0x3e0   : > { %v1434_v16 = vsel %vm858_vm2, %v2161_v15, 0.0 }
 0x3e1   : > { %1435 = vadd.xlane.f32.xlu0 %v1434_v16 }
 0x3ee   : > { %1439 = vrot.lane.b32.xlu1 %v2969_v34, %s2519_s23 }
 0x3f7   : > { %1274 = vrot.lane.b32.xlu0 %v2969_v34, %s2517_s19  ;;  %s2408_s19 = sshll.u32 %s2523_s4, 4  ;;  %s2409_s19 = int_to_ptr.vmem [resolvable:$false] %s2408_s19 }
 0x3f8   : > { %s2410_s12 = scalar_lea.vmem %s2409_s19, 256  ;;  %p2411_p7 = scmp.lt.s32.totalorder %s3033_s1, %s2409_s19 }
 0x3f9   : > { %p2412_p11 = scmp.lt.s32.totalorder %s2410_s12, %s2404_s21 }
 0x3fb   : > { %p2413_p5 = por %p2412_p11, %p2411_p7 }
 0x3fd   : > { %v943_v18 = vpop.xlane.xlu1 %942  ;;  %p2414_p2 = pnand %p2413_p5, %p2407_p9 }
 0x3fe   : > { %2162 = vrcp.f32 %v943_v18 }
 0x408   : > { %v2163_v19 = vpop.eup %2162 }
 0x409   : > { %v945_v20 = vmul.f32 %v2163_v19, %v2155_v62 }
 0x40b   : > { %1947 = vmatmul.mubr.msk.f32.vlgmr.msra.gmra.mrb[6].mxu1 %vm858_vm2, %v945_v20 }
 0x40c   : > { %1955 = vmatpush3.msra.mxu1 %v1110_v17  ;;  %1956 = vmatprep.mubr.msk.f32.mxu1 %vm2515_vm0, %v2516_v1 }
 0x40d   : > { %1964 = vmatprep.subr.mxu1 %v2516_v1 }
 0x466   : > { %v1105_v21 = vpop.xlane.xlu0 %1104 }
 0x467   : > { %2164 = vrcp.f32 %v1105_v21 }
 0x46a   : > { %v1271_v22 = vpop.xlane.xlu1 %1270 }
 0x46b   : > { %2166 = vrcp.f32 %v1271_v22 }
 0x46e   : > { %v1436_v23 = vpop.xlane.xlu0 %1435  ;;  %v1440_v29 = vpop.permute.xlu1 %1439 }
 0x46f   : > { %2168 = vrcp.f32 %v1436_v23 }
 0x470   : > { %2170 = vpow2.f32 %v1835_v47 }
 0x471   : > { %v2165_v24 = vpop.eup %2164 }
 0x472   : > { %v1107_v25 = vmul.f32 %v2165_v24, %v2157_v11  ;;  %v1275_v26 = vpop.permute.xlu0 %1274 }
 0x474   : > { %1957 = vmatmul.mubr.msk.f32.vlgmr.msra.gmra.mrb[8].mxu1 %vm858_vm2, %v1107_v25 }
 0x475   : > { %v2167_v27 = vpop.eup %2166  ;;  %1965 = vmatpush3.msra.mxu1 %v1275_v26  ;;  %1966 = vmatprep.mubr.msk.f32.mxu1 %vm2515_vm0, %v2516_v1 }
 0x476   : > { %v1273_v28 = vmul.f32 %v2167_v27, %v2159_v13  ;;  %1974 = vmatprep.subr.mxu1 %v2516_v1 }
 0x478   : > { %1967 = vmatmul.mubr.msk.f32.vlgmr.msra.gmra.mrb[10].mxu1 %vm858_vm2, %v1273_v28 }
 0x479   : > { %v2169_v30 = vpop.eup %2168  ;;  %1975 = vmatpush3.msra.mxu1 %v1440_v29  ;;  %1976 = vmatprep.mubr.msk.f32.mxu1 %vm2515_vm0, %v2516_v1 }
 0x47a   : > { %v1438_v31 = vmul.f32 %v2169_v30, %v2161_v15  ;;  %v2171_v48 = vpop.eup %2170 }
 0x47b   : > { %v854_v49 = vadd.f32 1.0, %v2171_v48 }
 0x47c   : > { %1977 = vmatmul.mubr.msk.f32.vlgmr.msra.gmra.mrb[12].mxu1 %vm858_vm2, %v1438_v31 }
 0x47d   : > { %2172 = vrcp.f32 %v854_v49 }
 0x487   : > { %v2173_v55 = vpop.eup %2172 }
 0x4de   : > { %v1015_v33 = vpop.f32.mrb[6].mxu1 }
 0x4df   : > { %v1948_v34 = vpop.f32.mrb[7].mxu1 }
 0x547   : > { %v1181_v41 = vpop.f32.mrb[8].mxu1 }
 0x548   : > { %1516 = vrot.lane.b32.xlu1 %v1181_v41, %s2520_s29  ;;  %v1958_v42 = vpop.f32.mrb[9].mxu1 }
 0x54b   : > { %v1346_v1 = vpop.f32.mrb[10].mxu1 }
 0x54c   : > { %1520 = vrot.lane.b32.xlu0 %v1346_v1, %s2521_s18  ;;  %v1968_v43 = vpop.f32.mrb[11].mxu1 }
 0x54f   : > { %v1511_v44 = vpop.f32.mrb[12].mxu1 }
 0x550   : > { %1524 = vrot.lane.b32.xlu1 %v1511_v44, %s2522_s22  ;;  %v1978_v45 = vpop.f32.mrb[13].mxu1 }
 0x5ba   : > { %v1517_v50 = vpop.permute.xlu1 %1516 }
 0x5bb   : > { %v1527_v52 = vsel %vm858_vm2, %v1015_v33, %v1517_v50 }
 0x5be   : > { %v1521_v51 = vpop.permute.xlu0 %1520 }
 0x5bf   : > { %v1529_v53 = vsel %vm1528_vm3, %v1527_v52, %v1521_v51 }
 0x5c2   : > { %v1525_v54 = vpop.permute.xlu1 %1524 }
 0x5c3   : > { %v1531_v56 = vsel %vm1530_vm4, %v1529_v53, %v1525_v54 }
 0x5c4   : > { %v1532_v32 = vmul.f32 %v2173_v55, %v1531_v56 }
 0x5c6   : > { %1988 = vmatmul.mubr.msk.f32.vlgmr.msra.gmra.mrb[10].mxu0 %vm545_vm1, %v1532_v32 }
 0x699   : > { %v1613_v58 = vpop.f32.mrb[10].mxu0 }
 0x69a   : > { %v1614_v59 = vadd.f32 %v1848_v57, %v1613_v58  ;;  %v1989_v60 = vpop.f32.mrb[11].mxu0 }
 0x69c   : > { %1617 = vst.msk [vmem:[%s538_s13] sm:$0xff] %vm545_vm1, %v1614_v59 }
 0x69d   : > { %2417 = shalt.err (!%p2414_p2)
}
 0x69e   : > { %s2418_s17 = scalar_lea.hbm %s3031_s26, 128  ;;  %s2422_s18 = scalar_lea.hbm %s3164_s20, 256 }
 0x69f   : > { %p2419_p8 = scmp.ne.s32.totalorder %s3031_s26, %s2418_s17  ;;  %p2423_p10 = scmp.lt.u32.totalorder %s3031_s26, %s3164_s20 }
 0x6a0   : > { %p2424_p13 = scmp.lt.u32.totalorder %s2422_s18, %s2418_s17  ;;  %p2426_p6 = scmp.lt.u32.totalorder %s2418_s17, %s3031_s26 }
 0x6a1   : > { %p2420_p0 = pnand %p2419_p8, %p3165_p1 }
 0x6a2   : > { %p2425_p3 = por %p2424_p13, %p2423_p10 }
 0x6a3   : > { %p2421_p4 = pneg %p2420_p0 }
 0x6a4   : > { %p2427_p12 = por %p2426_p6, %p2425_p3 }
 0x6a6   : > { %p2428_p9 = pnand %p2427_p12, %p2421_p4 }
 0x6a8   : > { %2431 = shalt.err (!%p2428_p9)
}
 0x6a9   : > { %2046 = dma.vmem_to_hbm [thread:$0]  (%p3165_p1), %s3033_s1, 128, %s3031_s26, %s1619_s30  }
 0x6aa PF: > { %s3166_s5 = sld [smem:[#allocation23_spill]]  ;;  %s3167_s3 = sld [smem:[#allocation30_spill]] }
 0x6ab   : > { %s3168_s27 = sld [smem:[#allocation26_spill]] }
 0x6b0   : > { %s1645_s16 = sand.u32 1, %s3166_s5   ;;  %p3169_p7 = scmp.ne.s32.totalorder %s3167_s3, 0 }
 0x6b1   : > { %p3170_p11 = scmp.ge.s32.totalorder %s3168_s27, 2  ;;  %s1646_s10 = scalar_lea.sflag [#allocation4], %s1645_s16 }
 0x6b3   : > { %p2075_p5 = pnand %p3170_p11, %p3169_p7 }
 0x6b5   : > { %2477 = dma.done.wait (!%p2075_p5), %s1646_s10, 128  }
 0x6b6   : > { %2479 = vsyncadd (!%p2075_p5), %s1646_s10, 4294967168  ;;  %s32_s18 = sadd.s32 1, %s3168_s27   ;;  %s3171_s28 = sld [smem:[#allocation29_spill]] }
 0x6b7   : > { %p29_p2 = scmp.ge.s32.totalorder %s32_s18, 4   ;;  %s3172_s16 = sld [smem:[#allocation25_spill]] }
 0x6b8   : > { %s3173_s17 = sld [smem:[#allocation27_spill]]  ;;  %s3174_s13 = smov %s2486_s14 }
 0x6b9   : > { %s3175_s14 = smov %s2490_s15  ;;  %31 = sbr.rel (!%p29_p2) target bundleno = 18 (0x12), region = 149 }
 0x6bc   : > { %s3176_s15 = smov %s3171_s28 }
 0x6c0   :  { %1651 = vsyncpa [#allocation3], 1 }
 0x6c1   :  { %1653 = vsyncpa [#allocation3 + $0x1], 1 }
 0x6c2   :  { %1654 = vsyncpa [#allocation6], 1 }
 0x6c3   :  { %1656 = vsyncpa [#allocation6 + $0x1], 1 }
 0x6c4   :  { %1657 = vsyncpa [#allocation9], 1 }
 0x6c5   :  { %1658 = vsyncpa [#allocation12], 1 }
 0x6c6   :  { %1659 = vsyncpa [#allocation15], 1 }
 0x6c7   :  { %1660 = vsyncpa [#allocation4], 1 }
 0x6c8   :  { %1662 = vsyncpa [#allocation4 + $0x1], 1 }

</bundles_post_ra>
